<compile_context>
chip_gen: v5e
topology: v5e:2x2
jax: 0.10.0
libtpu: 0.0.40
codegen_flags: <defaults>
</compile_context>

<pallas_src>
import functools

import jax
import jax.numpy as jnp
from jax import lax
from jax.experimental import pallas as pl
from jax.experimental.pallas import tpu as pltpu


# ----------------------------- Pallas kernel --------------------------------
def _bilstm_kernel(
    xcat_ref,   # (T, 2D)   bf16, [x(t) | x(T-1-t)]
    wih_ref,    # (2D, 8H)  bf16, merged input->gate weights (i/f/o cols pre-scaled 0.5)
    b_ref,      # (1, 8H)   f32,  merged biases (b_ih + b_hh per direction), same layout
    whh_ref,    # (2H, 8H)  f32,  block-diagonal recurrent weights, same layout
    wout_ref,   # (2H, Op)  bf16, folded h2t + stacked linears, lane-padded to Op
    bout_ref,   # (1, Op)   f32,  folded bias, lane-padded
    out_ref,    # (T, Op)   f32,  logits (lane-padded)
    # scratch:
    gx_ref,     # (T, 8H)   f32,  precomputed input contribution to all gates
    hs_ref,     # (T, 2H)   f32,  [h_fwd(t) | h_bwd(t)]
):
    T = xcat_ref.shape[0]
    H2 = whh_ref.shape[0]          # 2H
    H = H2 // 2

    # Single bf16 MXU matmul: row t holds fwd gate inputs for time t (blocks 0,2,4,6)
    # and bwd gate inputs for time T-1-t (blocks 1,3,5,7), biases included.
    gx_ref[...] = (
        jnp.dot(xcat_ref[...], wih_ref[...], preferred_element_type=jnp.float32)
        + b_ref[...]
    )

    whh = whh_ref[...]             # f32; recurrence kept in f32 on all generations

    # Gate layout along the 8H axis (H-sized blocks):
    #   [i_f, i_b, f_f, f_b, o_f, o_b, g_f, g_b]
    # i/f/o columns were pre-scaled by 0.5 -> sigmoid(x) == 0.5*tanh(g) + 0.5.
    def body(s, carry):
        h_cat, c_cat = carry                                   # each (1, 2H) = [fwd | bwd]
        g = gx_ref[pl.ds(s, 1), :] + jnp.dot(
            h_cat, whh, preferred_element_type=jnp.float32)    # (1, 8H), one MXU push
        t = jnp.tanh(g)                                        # ONE EUP launch, all 8H lanes
        sig = t[:, 0:6 * H] * 0.5 + 0.5                        # i|f|o both dirs (VPU)
        i_cat = sig[:, 0:2 * H]
        f_cat = sig[:, 2 * H:4 * H]
        o_cat = sig[:, 4 * H:6 * H]
        gat = t[:, 6 * H:8 * H]                                # g gate both dirs
        c_new = f_cat * c_cat + i_cat * gat
        h_new = o_cat * jnp.tanh(c_new)                        # 1 EUP launch
        # fwd hidden is time s, bwd hidden is time T-1-s
        hs_ref[pl.ds(s, 1), 0:H] = h_new[:, 0:H]
        hs_ref[pl.ds(T - 1 - s, 1), H:2 * H] = h_new[:, H:2 * H]
        return (h_new, c_new)

    zeros = jnp.zeros((1, H2), jnp.float32)
    lax.fori_loop(0, T, body, (zeros, zeros), unroll=min(T, 8))

    # Folded h2t (+ stacked linears), bf16 MXU operands, lane-dense output.
    out_ref[...] = (
        jnp.dot(hs_ref[...].astype(jnp.bfloat16), wout_ref[...],
                preferred_element_type=jnp.float32)
        + bout_ref[...]
    )


# ------------------------------- wrapper -------------------------------------
@functools.partial(jax.jit, static_argnames=("hidden_dim",))
def bilstm_forward(sentence, params, *, hidden_dim):
    """Equivalent of BiLSTM.forward(sentence, input_case=None); returns (T, 1, O)."""
    H = hidden_dim
    vectors = params["vectors"]
    x = jnp.take(vectors, sentence, axis=0).astype(jnp.float32)     # embedding gather (glue)
    T, D = x.shape

    # ---- fold h2t + stacked linears (no nonlinearity between them -> exact) ----
    w_out = params["w_h2t"].astype(jnp.float32)                     # (2H, O)
    b_out = params["b_h2t"].astype(jnp.float32)                     # (1, O)
    L = params["w_lin"].shape[0]
    for k in range(L):
        wk = params["w_lin"][k]
        w_out = w_out @ wk
        b_out = b_out @ wk + params["b_lin"][k][None, :]
    O = w_out.shape[1]
    O_pad = ((O + 127) // 128) * 128
    w_out_p = jnp.pad(w_out, ((0, 0), (0, O_pad - O))).astype(jnp.bfloat16)
    b_out_p = jnp.pad(b_out, ((0, 0), (0, O_pad - O)))

    # ---- interleaved gate layout [i_f, i_b, f_f, f_b, o_f, o_b, g_f, g_b] ----
    def gates(w):   # (in, 4H), PyTorch column order i, f, g, o
        return w[:, 0:H], w[:, H:2 * H], w[:, 2 * H:3 * H], w[:, 3 * H:4 * H]

    i_f, f_f, g_f, o_f = gates(params["w_ih_f"])
    i_b, f_b, g_b, o_b = gates(params["w_ih_b"])
    Zd = jnp.zeros((D, H), jnp.float32)
    wih_cat = jnp.concatenate([
        jnp.concatenate([i_f, Zd, f_f, Zd, o_f, Zd, g_f, Zd], axis=1),
        jnp.concatenate([Zd, i_b, Zd, f_b, Zd, o_b, Zd, g_b], axis=1),
    ], axis=0)                                                       # (2D, 8H)

    hi_f, hf_f, hg_f, ho_f = gates(params["w_hh_f"])
    hi_b, hf_b, hg_b, ho_b = gates(params["w_hh_b"])
    Zh = jnp.zeros((H, H), jnp.float32)
    whh_cat = jnp.concatenate([
        jnp.concatenate([hi_f, Zh, hf_f, Zh, ho_f, Zh, hg_f, Zh], axis=1),
        jnp.concatenate([Zh, hi_b, Zh, hf_b, Zh, ho_b, Zh, hg_b], axis=1),
    ], axis=0)                                                       # (2H, 8H)

    bi_f, bf_f, bg_f, bo_f = gates(params["b_f"])
    bi_b, bf_b, bg_b, bo_b = gates(params["b_b"])
    b_cat = jnp.concatenate(
        [bi_f, bi_b, bf_f, bf_b, bo_f, bo_b, bg_f, bg_b], axis=1)    # (1, 8H)

    # Pre-scale the sigmoid gates (first 6H lanes) by 0.5 so the kernel can use a
    # single tanh launch over all 8H lanes: sigmoid(x) = 0.5*tanh(x/2) + 0.5.
    gate_scale = jnp.concatenate(
        [jnp.full((1, 6 * H), 0.5, jnp.float32), jnp.ones((1, 2 * H), jnp.float32)],
        axis=1)
    wih_cat = (wih_cat * gate_scale).astype(jnp.bfloat16)            # bf16 MXU operand
    whh_cat = whh_cat * gate_scale                                   # f32 (recurrence)
    b_cat = b_cat * gate_scale                                       # f32

    # x_cat row t = [x(t) | x(T-1-t)] so a single matmul serves both directions.
    x_cat = jnp.concatenate([x, x[::-1]], axis=1).astype(jnp.bfloat16)   # (T, 2D) bf16

    # VMEM budget: operands + output + scratch, doubled for pipeline buffers, with
    # headroom; capped below v7x's 64 MiB physical VMEM.
    operand_bytes = (
        T * 2 * D * 2 + 2 * D * 8 * H * 2 + 8 * H * 4 + 2 * H * 8 * H * 4
        + 2 * H * O_pad * 2 + O_pad * 4 + T * O_pad * 4
    )
    scratch_bytes = T * 8 * H * 4 + T * 2 * H * 4
    vmem_limit = min(max(2 * operand_bytes + scratch_bytes + (4 << 20), 16 << 20),
                     48 << 20)

    logits_p = pl.pallas_call(
        _bilstm_kernel,
        out_shape=jax.ShapeDtypeStruct((T, O_pad), jnp.float32),
        scratch_shapes=[
            pltpu.VMEM((T, 8 * H), jnp.float32),   # gx
            pltpu.VMEM((T, 2 * H), jnp.float32),   # hs (fwd | bwd)
        ],
        compiler_params=pltpu.CompilerParams(vmem_limit_bytes=vmem_limit),
    )(x_cat, wih_cat, b_cat, whh_cat, w_out_p, b_out_p)

    return logits_p[:, None, :O]      # match PyTorch (T, 1, O)


# --------------------------- pure-JAX reference -------------------------------
def bilstm_reference(sentence, params, hidden_dim):
    x = jnp.take(params["vectors"], sentence, axis=0).astype(jnp.float32)
    T, _ = x.shape
    H = hidden_dim

    def run_dir(wih, whh, b, reverse):
        h = jnp.zeros((H,), jnp.float32)
        c = jnp.zeros((H,), jnp.float32)
        outs = [None] * T
        order = range(T - 1, -1, -1) if reverse else range(T)
        for t in order:
            g = x[t] @ wih + h @ whh + b[0]
            i = jax.nn.sigmoid(g[0 * H:1 * H])
            f = jax.nn.sigmoid(g[1 * H:2 * H])
            gg = jnp.tanh(g[2 * H:3 * H])
            o = jax.nn.sigmoid(g[3 * H:4 * H])
            c = f * c + i * gg
            h = o * jnp.tanh(c)
            outs[t] = h
        return jnp.stack(outs)

    hf = run_dir(params["w_ih_f"], params["w_hh_f"], params["b_f"], reverse=False)
    hb = run_dir(params["w_ih_b"], params["w_hh_b"], params["b_b"], reverse=True)
    lstm_out = jnp.concatenate([hf, hb], axis=-1)
    logits = lstm_out @ params["w_h2t"] + params["b_h2t"][0]
    for k in range(params["w_lin"].shape[0]):
        logits = logits @ params["w_lin"][k] + params["b_lin"][k]
    return logits[:, None, :]


# -------------------------------- main ---------------------------------------
if __name__ == "__main__":
    # small config consistent with the module
    V = 20                     # vocab size
    EMB = 16                   # embedding_dimension (input_rep = 0 -> input_dim = EMB)
    H = 32                     # hidden_dim
    O = 8                      # output_dimension
    NUM_LAYERS = 2             # -> one extra Linear(O, O)
    T = 8                      # sentence length

    key = jax.random.PRNGKey(0)
    ks = jax.random.split(key, 16)
    s = 0.1

    def rnd(k, shape):
        return (s * jax.random.normal(k, shape)).astype(jnp.float32)

    params = {
        "vectors": jax.random.normal(ks[0], (V, EMB), jnp.float32),
        # LSTM weights, stored transposed: (in, 4H); PyTorch gate order i,f,g,o.
        "w_ih_f": rnd(ks[1], (EMB, 4 * H)),
        "w_hh_f": rnd(ks[2], (H, 4 * H)),
        "b_f":    rnd(ks[3], (1, 4 * H)),   # b_ih + b_hh pre-summed
        "w_ih_b": rnd(ks[4], (EMB, 4 * H)),
        "w_hh_b": rnd(ks[5], (H, 4 * H)),
        "b_b":    rnd(ks[6], (1, 4 * H)),
        # h2t Linear, transposed: (2H, O)
        "w_h2t":  rnd(ks[7], (2 * H, O)),
        "b_h2t":  rnd(ks[8], (1, O)),
        # extra stacked linears: (L-1, O, O) / (L-1, O)
        "w_lin":  rnd(ks[9], (NUM_LAYERS - 1, O, O)),
        "b_lin":  rnd(ks[10], (NUM_LAYERS - 1, O)),
    }

    sentence = jax.random.randint(ks[11], (T,), 0, V, dtype=jnp.int32)

    out = bilstm_forward(sentence, params, hidden_dim=H)
    out = jax.block_until_ready(out)

    ref = bilstm_reference(sentence, params, H)
    assert out.shape == (T, 1, O), out.shape
    # Tolerance loosened vs the all-f32 version: the gate-precompute and output
    # matmuls now use bf16 MXU operands (gate math itself stays f32).
    assert jnp.allclose(out, ref, atol=1e-2, rtol=1e-2), float(jnp.max(jnp.abs(out - ref)))

    print("KERNEL_OK")
</pallas_src>

<mosaic_0001>
module attributes {stable_mosaic.version = 11 : i64} {
  func.func @_bilstm_kernel(%arg0: memref<8x32xbf16, #tpu.memory_space<vmem>>, %arg1: memref<32x256xbf16, #tpu.memory_space<vmem>>, %arg2: memref<1x256xf32, #tpu.memory_space<vmem>>, %arg3: memref<64x256xf32, #tpu.memory_space<vmem>>, %arg4: memref<64x128xbf16, #tpu.memory_space<vmem>>, %arg5: memref<1x128xf32, #tpu.memory_space<vmem>>, %arg6: memref<8x128xf32, #tpu.memory_space<vmem>>, %arg7: memref<8x256xf32, #tpu.memory_space<vmem>>, %arg8: memref<8x64xf32, #tpu.memory_space<vmem>>) attributes {dimension_semantics = [], scalar_prefetch = 0 : i64, scratch_operands = 2 : i64, tpu.core_type = #tpu.core_type<tc>} {
    %c0 = arith.constant 0 : index
    %c0_0 = arith.constant 0 : index
    %0 = vector.load %arg0[%c0, %c0_0] : memref<8x32xbf16, #tpu.memory_space<vmem>>, vector<8x32xbf16>
    %c0_1 = arith.constant 0 : index
    %c0_2 = arith.constant 0 : index
    %1 = vector.load %arg1[%c0_1, %c0_2] : memref<32x256xbf16, #tpu.memory_space<vmem>>, vector<32x256xbf16>
    %cst = arith.constant dense<0.000000e+00> : vector<8x256xf32>
    %2 = tpu.matmul %0, %1, %cst {dimension_numbers = #tpu.dot_dimension_numbers<[1], [0], [0], [1], [0, 0, 1, 1], [], []>} : vector<8x32xbf16>, vector<32x256xbf16>, vector<8x256xf32> -> vector<8x256xf32>
    %c0_3 = arith.constant 0 : index
    %c0_4 = arith.constant 0 : index
    %3 = vector.load %arg2[%c0_3, %c0_4] : memref<1x256xf32, #tpu.memory_space<vmem>>, vector<1x256xf32>
    %4 = vector.broadcast %3 : vector<1x256xf32> to vector<8x256xf32>
    %5 = arith.addf %2, %4 : vector<8x256xf32>
    %c0_5 = arith.constant 0 : index
    %c0_6 = arith.constant 0 : index
    %6 = vector.load %arg7[%c0_5, %c0_6] : memref<8x256xf32, #tpu.memory_space<vmem>>, vector<8x256xf32>
    tpu.vector_store %arg7[%c0_5, %c0_6], %5 {strides = array<i32>} : memref<8x256xf32, #tpu.memory_space<vmem>>, vector<8x256xf32>,
    %c0_7 = arith.constant 0 : index
    %c0_8 = arith.constant 0 : index
    %7 = vector.load %arg3[%c0_7, %c0_8] : memref<64x256xf32, #tpu.memory_space<vmem>>, vector<64x256xf32>
    %cst_9 = arith.constant 0.000000e+00 : f32
    %8 = vector.broadcast %cst_9 : f32 to vector<1x64xf32>
    %c0_i32 = arith.constant 0 : i32
    %9 = arith.index_cast %c0_i32 : i32 to index
    %c0_10 = arith.constant 0 : index
    %10 = vector.load %arg7[%9, %c0_10] : memref<8x256xf32, #tpu.memory_space<vmem>>, vector<1x256xf32>
    %cst_11 = arith.constant dense<0.000000e+00> : vector<1x256xf32>
    %11 = tpu.matmul %8, %7, %cst_11 {dimension_numbers = #tpu.dot_dimension_numbers<[1], [0], [0], [1], [0, 0, 1, 1], [], []>} : vector<1x64xf32>, vector<64x256xf32>, vector<1x256xf32> -> vector<1x256xf32>
    %12 = arith.addf %10, %11 : vector<1x256xf32>
    %13 = math.tanh %12 : vector<1x256xf32>
    %14 = vector.extract_strided_slice %13 {offsets = [0, 0], sizes = [1, 192], strides = [1, 1]} : vector<1x256xf32> to vector<1x192xf32>
    %cst_12 = arith.constant 5.000000e-01 : f32
    %15 = vector.broadcast %cst_12 : f32 to vector<1x192xf32>
    %16 = arith.mulf %14, %15 : vector<1x192xf32>
    %cst_13 = arith.constant 5.000000e-01 : f32
    %17 = vector.broadcast %cst_13 : f32 to vector<1x192xf32>
    %18 = arith.addf %16, %17 : vector<1x192xf32>
    %19 = vector.extract_strided_slice %18 {offsets = [0, 0], sizes = [1, 64], strides = [1, 1]} : vector<1x192xf32> to vector<1x64xf32>
    %20 = vector.extract_strided_slice %18 {offsets = [0, 64], sizes = [1, 64], strides = [1, 1]} : vector<1x192xf32> to vector<1x64xf32>
    %21 = vector.extract_strided_slice %18 {offsets = [0, 128], sizes = [1, 64], strides = [1, 1]} : vector<1x192xf32> to vector<1x64xf32>
    %22 = vector.extract_strided_slice %13 {offsets = [0, 192], sizes = [1, 64], strides = [1, 1]} : vector<1x256xf32> to vector<1x64xf32>
    %23 = arith.mulf %20, %8 : vector<1x64xf32>
    %24 = arith.mulf %19, %22 : vector<1x64xf32>
    %25 = arith.addf %23, %24 : vector<1x64xf32>
    %26 = math.tanh %25 : vector<1x64xf32>
    %27 = arith.mulf %21, %26 : vector<1x64xf32>
    %28 = vector.extract_strided_slice %27 {offsets = [0, 0], sizes = [1, 32], strides = [1, 1]} : vector<1x64xf32> to vector<1x32xf32>
    %29 = arith.index_cast %c0_i32 : i32 to index
    %c0_14 = arith.constant 0 : index
    %30 = vector.load %arg8[%29, %c0_14] : memref<8x64xf32, #tpu.memory_space<vmem>>, vector<1x32xf32>
    tpu.vector_store %arg8[%29, %c0_14], %28 {strides = array<i32>} : memref<8x64xf32, #tpu.memory_space<vmem>>, vector<1x32xf32>,
    %31 = vector.extract_strided_slice %27 {offsets = [0, 32], sizes = [1, 32], strides = [1, 1]} : vector<1x64xf32> to vector<1x32xf32>
    %c7_i32 = arith.constant 7 : i32
    %32 = arith.subi %c7_i32, %c0_i32 : i32
    %33 = arith.index_cast %32 : i32 to index
    %c32 = arith.constant 32 : index
    %34 = vector.load %arg8[%33, %c32] : memref<8x64xf32, #tpu.memory_space<vmem>>, vector<1x32xf32>
    tpu.vector_store %arg8[%33, %c32], %31 {strides = array<i32>} : memref<8x64xf32, #tpu.memory_space<vmem>>, vector<1x32xf32>,
    %c1_i32 = arith.constant 1 : i32
    %35 = arith.index_cast %c1_i32 : i32 to index
    %c0_15 = arith.constant 0 : index
    %36 = vector.load %arg7[%35, %c0_15] : memref<8x256xf32, #tpu.memory_space<vmem>>, vector<1x256xf32>
    %cst_16 = arith.constant dense<0.000000e+00> : vector<1x256xf32>
    %37 = tpu.matmul %27, %7, %cst_16 {dimension_numbers = #tpu.dot_dimension_numbers<[1], [0], [0], [1], [0, 0, 1, 1], [], []>} : vector<1x64xf32>, vector<64x256xf32>, vector<1x256xf32> -> vector<1x256xf32>
    %38 = arith.addf %36, %37 : vector<1x256xf32>
    %39 = math.tanh %38 : vector<1x256xf32>
    %40 = vector.extract_strided_slice %39 {offsets = [0, 0], sizes = [1, 192], strides = [1, 1]} : vector<1x256xf32> to vector<1x192xf32>
    %cst_17 = arith.constant 5.000000e-01 : f32
    %41 = vector.broadcast %cst_17 : f32 to vector<1x192xf32>
    %42 = arith.mulf %40, %41 : vector<1x192xf32>
    %cst_18 = arith.constant 5.000000e-01 : f32
    %43 = vector.broadcast %cst_18 : f32 to vector<1x192xf32>
    %44 = arith.addf %42, %43 : vector<1x192xf32>
    %45 = vector.extract_strided_slice %44 {offsets = [0, 0], sizes = [1, 64], strides = [1, 1]} : vector<1x192xf32> to vector<1x64xf32>
    %46 = vector.extract_strided_slice %44 {offsets = [0, 64], sizes = [1, 64], strides = [1, 1]} : vector<1x192xf32> to vector<1x64xf32>
    %47 = vector.extract_strided_slice %44 {offsets = [0, 128], sizes = [1, 64], strides = [1, 1]} : vector<1x192xf32> to vector<1x64xf32>
    %48 = vector.extract_strided_slice %39 {offsets = [0, 192], sizes = [1, 64], strides = [1, 1]} : vector<1x256xf32> to vector<1x64xf32>
    %49 = arith.mulf %46, %25 : vector<1x64xf32>
    %50 = arith.mulf %45, %48 : vector<1x64xf32>
    %51 = arith.addf %49, %50 : vector<1x64xf32>
    %52 = math.tanh %51 : vector<1x64xf32>
    %53 = arith.mulf %47, %52 : vector<1x64xf32>
    %54 = vector.extract_strided_slice %53 {offsets = [0, 0], sizes = [1, 32], strides = [1, 1]} : vector<1x64xf32> to vector<1x32xf32>
    %55 = arith.index_cast %c1_i32 : i32 to index
    %c0_19 = arith.constant 0 : index
    %56 = vector.load %arg8[%55, %c0_19] : memref<8x64xf32, #tpu.memory_space<vmem>>, vector<1x32xf32>
    tpu.vector_store %arg8[%55, %c0_19], %54 {strides = array<i32>} : memref<8x64xf32, #tpu.memory_space<vmem>>, vector<1x32xf32>,
    %57 = vector.extract_strided_slice %53 {offsets = [0, 32], sizes = [1, 32], strides = [1, 1]} : vector<1x64xf32> to vector<1x32xf32>
    %c7_i32_20 = arith.constant 7 : i32
    %58 = arith.subi %c7_i32_20, %c1_i32 : i32
    %59 = arith.index_cast %58 : i32 to index
    %c32_21 = arith.constant 32 : index
    %60 = vector.load %arg8[%59, %c32_21] : memref<8x64xf32, #tpu.memory_space<vmem>>, vector<1x32xf32>
    tpu.vector_store %arg8[%59, %c32_21], %57 {strides = array<i32>} : memref<8x64xf32, #tpu.memory_space<vmem>>, vector<1x32xf32>,
    %c2_i32 = arith.constant 2 : i32
    %61 = arith.index_cast %c2_i32 : i32 to index
    %c0_22 = arith.constant 0 : index
    %62 = vector.load %arg7[%61, %c0_22] : memref<8x256xf32, #tpu.memory_space<vmem>>, vector<1x256xf32>
    %cst_23 = arith.constant dense<0.000000e+00> : vector<1x256xf32>
    %63 = tpu.matmul %53, %7, %cst_23 {dimension_numbers = #tpu.dot_dimension_numbers<[1], [0], [0], [1], [0, 0, 1, 1], [], []>} : vector<1x64xf32>, vector<64x256xf32>, vector<1x256xf32> -> vector<1x256xf32>
    %64 = arith.addf %62, %63 : vector<1x256xf32>
    %65 = math.tanh %64 : vector<1x256xf32>
    %66 = vector.extract_strided_slice %65 {offsets = [0, 0], sizes = [1, 192], strides = [1, 1]} : vector<1x256xf32> to vector<1x192xf32>
    %cst_24 = arith.constant 5.000000e-01 : f32
    %67 = vector.broadcast %cst_24 : f32 to vector<1x192xf32>
    %68 = arith.mulf %66, %67 : vector<1x192xf32>
    %cst_25 = arith.constant 5.000000e-01 : f32
    %69 = vector.broadcast %cst_25 : f32 to vector<1x192xf32>
    %70 = arith.addf %68, %69 : vector<1x192xf32>
    %71 = vector.extract_strided_slice %70 {offsets = [0, 0], sizes = [1, 64], strides = [1, 1]} : vector<1x192xf32> to vector<1x64xf32>
    %72 = vector.extract_strided_slice %70 {offsets = [0, 64], sizes = [1, 64], strides = [1, 1]} : vector<1x192xf32> to vector<1x64xf32>
    %73 = vector.extract_strided_slice %70 {offsets = [0, 128], sizes = [1, 64], strides = [1, 1]} : vector<1x192xf32> to vector<1x64xf32>
    %74 = vector.extract_strided_slice %65 {offsets = [0, 192], sizes = [1, 64], strides = [1, 1]} : vector<1x256xf32> to vector<1x64xf32>
    %75 = arith.mulf %72, %51 : vector<1x64xf32>
    %76 = arith.mulf %71, %74 : vector<1x64xf32>
    %77 = arith.addf %75, %76 : vector<1x64xf32>
    %78 = math.tanh %77 : vector<1x64xf32>
    %79 = arith.mulf %73, %78 : vector<1x64xf32>
    %80 = vector.extract_strided_slice %79 {offsets = [0, 0], sizes = [1, 32], strides = [1, 1]} : vector<1x64xf32> to vector<1x32xf32>
    %81 = arith.index_cast %c2_i32 : i32 to index
    %c0_26 = arith.constant 0 : index
    %82 = vector.load %arg8[%81, %c0_26] : memref<8x64xf32, #tpu.memory_space<vmem>>, vector<1x32xf32>
    tpu.vector_store %arg8[%81, %c0_26], %80 {strides = array<i32>} : memref<8x64xf32, #tpu.memory_space<vmem>>, vector<1x32xf32>,
    %83 = vector.extract_strided_slice %79 {offsets = [0, 32], sizes = [1, 32], strides = [1, 1]} : vector<1x64xf32> to vector<1x32xf32>
    %c7_i32_27 = arith.constant 7 : i32
    %84 = arith.subi %c7_i32_27, %c2_i32 : i32
    %85 = arith.index_cast %84 : i32 to index
    %c32_28 = arith.constant 32 : index
    %86 = vector.load %arg8[%85, %c32_28] : memref<8x64xf32, #tpu.memory_space<vmem>>, vector<1x32xf32>
    tpu.vector_store %arg8[%85, %c32_28], %83 {strides = array<i32>} : memref<8x64xf32, #tpu.memory_space<vmem>>, vector<1x32xf32>,
    %c3_i32 = arith.constant 3 : i32
    %87 = arith.index_cast %c3_i32 : i32 to index
    %c0_29 = arith.constant 0 : index
    %88 = vector.load %arg7[%87, %c0_29] : memref<8x256xf32, #tpu.memory_space<vmem>>, vector<1x256xf32>
    %cst_30 = arith.constant dense<0.000000e+00> : vector<1x256xf32>
    %89 = tpu.matmul %79, %7, %cst_30 {dimension_numbers = #tpu.dot_dimension_numbers<[1], [0], [0], [1], [0, 0, 1, 1], [], []>} : vector<1x64xf32>, vector<64x256xf32>, vector<1x256xf32> -> vector<1x256xf32>
    %90 = arith.addf %88, %89 : vector<1x256xf32>
    %91 = math.tanh %90 : vector<1x256xf32>
    %92 = vector.extract_strided_slice %91 {offsets = [0, 0], sizes = [1, 192], strides = [1, 1]} : vector<1x256xf32> to vector<1x192xf32>
    %cst_31 = arith.constant 5.000000e-01 : f32
    %93 = vector.broadcast %cst_31 : f32 to vector<1x192xf32>
    %94 = arith.mulf %92, %93 : vector<1x192xf32>
    %cst_32 = arith.constant 5.000000e-01 : f32
    %95 = vector.broadcast %cst_32 : f32 to vector<1x192xf32>
    %96 = arith.addf %94, %95 : vector<1x192xf32>
    %97 = vector.extract_strided_slice %96 {offsets = [0, 0], sizes = [1, 64], strides = [1, 1]} : vector<1x192xf32> to vector<1x64xf32>
    %98 = vector.extract_strided_slice %96 {offsets = [0, 64], sizes = [1, 64], strides = [1, 1]} : vector<1x192xf32> to vector<1x64xf32>
    %99 = vector.extract_strided_slice %96 {offsets = [0, 128], sizes = [1, 64], strides = [1, 1]} : vector<1x192xf32> to vector<1x64xf32>
    %100 = vector.extract_strided_slice %91 {offsets = [0, 192], sizes = [1, 64], strides = [1, 1]} : vector<1x256xf32> to vector<1x64xf32>
    %101 = arith.mulf %98, %77 : vector<1x64xf32>
    %102 = arith.mulf %97, %100 : vector<1x64xf32>
    %103 = arith.addf %101, %102 : vector<1x64xf32>
    %104 = math.tanh %103 : vector<1x64xf32>
    %105 = arith.mulf %99, %104 : vector<1x64xf32>
    %106 = vector.extract_strided_slice %105 {offsets = [0, 0], sizes = [1, 32], strides = [1, 1]} : vector<1x64xf32> to vector<1x32xf32>
    %107 = arith.index_cast %c3_i32 : i32 to index
    %c0_33 = arith.constant 0 : index
    %108 = vector.load %arg8[%107, %c0_33] : memref<8x64xf32, #tpu.memory_space<vmem>>, vector<1x32xf32>
    tpu.vector_store %arg8[%107, %c0_33], %106 {strides = array<i32>} : memref<8x64xf32, #tpu.memory_space<vmem>>, vector<1x32xf32>,
    %109 = vector.extract_strided_slice %105 {offsets = [0, 32], sizes = [1, 32], strides = [1, 1]} : vector<1x64xf32> to vector<1x32xf32>
    %c7_i32_34 = arith.constant 7 : i32
    %110 = arith.subi %c7_i32_34, %c3_i32 : i32
    %111 = arith.index_cast %110 : i32 to index
    %c32_35 = arith.constant 32 : index
    %112 = vector.load %arg8[%111, %c32_35] : memref<8x64xf32, #tpu.memory_space<vmem>>, vector<1x32xf32>
    tpu.vector_store %arg8[%111, %c32_35], %109 {strides = array<i32>} : memref<8x64xf32, #tpu.memory_space<vmem>>, vector<1x32xf32>,
    %c4_i32 = arith.constant 4 : i32
    %113 = arith.index_cast %c4_i32 : i32 to index
    %c0_36 = arith.constant 0 : index
    %114 = vector.load %arg7[%113, %c0_36] : memref<8x256xf32, #tpu.memory_space<vmem>>, vector<1x256xf32>
    %cst_37 = arith.constant dense<0.000000e+00> : vector<1x256xf32>
    %115 = tpu.matmul %105, %7, %cst_37 {dimension_numbers = #tpu.dot_dimension_numbers<[1], [0], [0], [1], [0, 0, 1, 1], [], []>} : vector<1x64xf32>, vector<64x256xf32>, vector<1x256xf32> -> vector<1x256xf32>
    %116 = arith.addf %114, %115 : vector<1x256xf32>
    %117 = math.tanh %116 : vector<1x256xf32>
    %118 = vector.extract_strided_slice %117 {offsets = [0, 0], sizes = [1, 192], strides = [1, 1]} : vector<1x256xf32> to vector<1x192xf32>
    %cst_38 = arith.constant 5.000000e-01 : f32
    %119 = vector.broadcast %cst_38 : f32 to vector<1x192xf32>
    %120 = arith.mulf %118, %119 : vector<1x192xf32>
    %cst_39 = arith.constant 5.000000e-01 : f32
    %121 = vector.broadcast %cst_39 : f32 to vector<1x192xf32>
    %122 = arith.addf %120, %121 : vector<1x192xf32>
    %123 = vector.extract_strided_slice %122 {offsets = [0, 0], sizes = [1, 64], strides = [1, 1]} : vector<1x192xf32> to vector<1x64xf32>
    %124 = vector.extract_strided_slice %122 {offsets = [0, 64], sizes = [1, 64], strides = [1, 1]} : vector<1x192xf32> to vector<1x64xf32>
    %125 = vector.extract_strided_slice %122 {offsets = [0, 128], sizes = [1, 64], strides = [1, 1]} : vector<1x192xf32> to vector<1x64xf32>
    %126 = vector.extract_strided_slice %117 {offsets = [0, 192], sizes = [1, 64], strides = [1, 1]} : vector<1x256xf32> to vector<1x64xf32>
    %127 = arith.mulf %124, %103 : vector<1x64xf32>
    %128 = arith.mulf %123, %126 : vector<1x64xf32>
    %129 = arith.addf %127, %128 : vector<1x64xf32>
    %130 = math.tanh %129 : vector<1x64xf32>
    %131 = arith.mulf %125, %130 : vector<1x64xf32>
    %132 = vector.extract_strided_slice %131 {offsets = [0, 0], sizes = [1, 32], strides = [1, 1]} : vector<1x64xf32> to vector<1x32xf32>
    %133 = arith.index_cast %c4_i32 : i32 to index
    %c0_40 = arith.constant 0 : index
    %134 = vector.load %arg8[%133, %c0_40] : memref<8x64xf32, #tpu.memory_space<vmem>>, vector<1x32xf32>
    tpu.vector_store %arg8[%133, %c0_40], %132 {strides = array<i32>} : memref<8x64xf32, #tpu.memory_space<vmem>>, vector<1x32xf32>,
    %135 = vector.extract_strided_slice %131 {offsets = [0, 32], sizes = [1, 32], strides = [1, 1]} : vector<1x64xf32> to vector<1x32xf32>
    %c7_i32_41 = arith.constant 7 : i32
    %136 = arith.subi %c7_i32_41, %c4_i32 : i32
    %137 = arith.index_cast %136 : i32 to index
    %c32_42 = arith.constant 32 : index
    %138 = vector.load %arg8[%137, %c32_42] : memref<8x64xf32, #tpu.memory_space<vmem>>, vector<1x32xf32>
    tpu.vector_store %arg8[%137, %c32_42], %135 {strides = array<i32>} : memref<8x64xf32, #tpu.memory_space<vmem>>, vector<1x32xf32>,
    %c5_i32 = arith.constant 5 : i32
    %139 = arith.index_cast %c5_i32 : i32 to index
    %c0_43 = arith.constant 0 : index
    %140 = vector.load %arg7[%139, %c0_43] : memref<8x256xf32, #tpu.memory_space<vmem>>, vector<1x256xf32>
    %cst_44 = arith.constant dense<0.000000e+00> : vector<1x256xf32>
    %141 = tpu.matmul %131, %7, %cst_44 {dimension_numbers = #tpu.dot_dimension_numbers<[1], [0], [0], [1], [0, 0, 1, 1], [], []>} : vector<1x64xf32>, vector<64x256xf32>, vector<1x256xf32> -> vector<1x256xf32>
    %142 = arith.addf %140, %141 : vector<1x256xf32>
    %143 = math.tanh %142 : vector<1x256xf32>
    %144 = vector.extract_strided_slice %143 {offsets = [0, 0], sizes = [1, 192], strides = [1, 1]} : vector<1x256xf32> to vector<1x192xf32>
    %cst_45 = arith.constant 5.000000e-01 : f32
    %145 = vector.broadcast %cst_45 : f32 to vector<1x192xf32>
    %146 = arith.mulf %144, %145 : vector<1x192xf32>
    %cst_46 = arith.constant 5.000000e-01 : f32
    %147 = vector.broadcast %cst_46 : f32 to vector<1x192xf32>
    %148 = arith.addf %146, %147 : vector<1x192xf32>
    %149 = vector.extract_strided_slice %148 {offsets = [0, 0], sizes = [1, 64], strides = [1, 1]} : vector<1x192xf32> to vector<1x64xf32>
    %150 = vector.extract_strided_slice %148 {offsets = [0, 64], sizes = [1, 64], strides = [1, 1]} : vector<1x192xf32> to vector<1x64xf32>
    %151 = vector.extract_strided_slice %148 {offsets = [0, 128], sizes = [1, 64], strides = [1, 1]} : vector<1x192xf32> to vector<1x64xf32>
    %152 = vector.extract_strided_slice %143 {offsets = [0, 192], sizes = [1, 64], strides = [1, 1]} : vector<1x256xf32> to vector<1x64xf32>
    %153 = arith.mulf %150, %129 : vector<1x64xf32>
    %154 = arith.mulf %149, %152 : vector<1x64xf32>
    %155 = arith.addf %153, %154 : vector<1x64xf32>
    %156 = math.tanh %155 : vector<1x64xf32>
    %157 = arith.mulf %151, %156 : vector<1x64xf32>
    %158 = vector.extract_strided_slice %157 {offsets = [0, 0], sizes = [1, 32], strides = [1, 1]} : vector<1x64xf32> to vector<1x32xf32>
    %159 = arith.index_cast %c5_i32 : i32 to index
    %c0_47 = arith.constant 0 : index
    %160 = vector.load %arg8[%159, %c0_47] : memref<8x64xf32, #tpu.memory_space<vmem>>, vector<1x32xf32>
    tpu.vector_store %arg8[%159, %c0_47], %158 {strides = array<i32>} : memref<8x64xf32, #tpu.memory_space<vmem>>, vector<1x32xf32>,
    %161 = vector.extract_strided_slice %157 {offsets = [0, 32], sizes = [1, 32], strides = [1, 1]} : vector<1x64xf32> to vector<1x32xf32>
    %c7_i32_48 = arith.constant 7 : i32
    %162 = arith.subi %c7_i32_48, %c5_i32 : i32
    %163 = arith.index_cast %162 : i32 to index
    %c32_49 = arith.constant 32 : index
    %164 = vector.load %arg8[%163, %c32_49] : memref<8x64xf32, #tpu.memory_space<vmem>>, vector<1x32xf32>
    tpu.vector_store %arg8[%163, %c32_49], %161 {strides = array<i32>} : memref<8x64xf32, #tpu.memory_space<vmem>>, vector<1x32xf32>,
    %c6_i32 = arith.constant 6 : i32
    %165 = arith.index_cast %c6_i32 : i32 to index
    %c0_50 = arith.constant 0 : index
    %166 = vector.load %arg7[%165, %c0_50] : memref<8x256xf32, #tpu.memory_space<vmem>>, vector<1x256xf32>
    %cst_51 = arith.constant dense<0.000000e+00> : vector<1x256xf32>
    %167 = tpu.matmul %157, %7, %cst_51 {dimension_numbers = #tpu.dot_dimension_numbers<[1], [0], [0], [1], [0, 0, 1, 1], [], []>} : vector<1x64xf32>, vector<64x256xf32>, vector<1x256xf32> -> vector<1x256xf32>
    %168 = arith.addf %166, %167 : vector<1x256xf32>
    %169 = math.tanh %168 : vector<1x256xf32>
    %170 = vector.extract_strided_slice %169 {offsets = [0, 0], sizes = [1, 192], strides = [1, 1]} : vector<1x256xf32> to vector<1x192xf32>
    %cst_52 = arith.constant 5.000000e-01 : f32
    %171 = vector.broadcast %cst_52 : f32 to vector<1x192xf32>
    %172 = arith.mulf %170, %171 : vector<1x192xf32>
    %cst_53 = arith.constant 5.000000e-01 : f32
    %173 = vector.broadcast %cst_53 : f32 to vector<1x192xf32>
    %174 = arith.addf %172, %173 : vector<1x192xf32>
    %175 = vector.extract_strided_slice %174 {offsets = [0, 0], sizes = [1, 64], strides = [1, 1]} : vector<1x192xf32> to vector<1x64xf32>
    %176 = vector.extract_strided_slice %174 {offsets = [0, 64], sizes = [1, 64], strides = [1, 1]} : vector<1x192xf32> to vector<1x64xf32>
    %177 = vector.extract_strided_slice %174 {offsets = [0, 128], sizes = [1, 64], strides = [1, 1]} : vector<1x192xf32> to vector<1x64xf32>
    %178 = vector.extract_strided_slice %169 {offsets = [0, 192], sizes = [1, 64], strides = [1, 1]} : vector<1x256xf32> to vector<1x64xf32>
    %179 = arith.mulf %176, %155 : vector<1x64xf32>
    %180 = arith.mulf %175, %178 : vector<1x64xf32>
    %181 = arith.addf %179, %180 : vector<1x64xf32>
    %182 = math.tanh %181 : vector<1x64xf32>
    %183 = arith.mulf %177, %182 : vector<1x64xf32>
    %184 = vector.extract_strided_slice %183 {offsets = [0, 0], sizes = [1, 32], strides = [1, 1]} : vector<1x64xf32> to vector<1x32xf32>
    %185 = arith.index_cast %c6_i32 : i32 to index
    %c0_54 = arith.constant 0 : index
    %186 = vector.load %arg8[%185, %c0_54] : memref<8x64xf32, #tpu.memory_space<vmem>>, vector<1x32xf32>
    tpu.vector_store %arg8[%185, %c0_54], %184 {strides = array<i32>} : memref<8x64xf32, #tpu.memory_space<vmem>>, vector<1x32xf32>,
    %187 = vector.extract_strided_slice %183 {offsets = [0, 32], sizes = [1, 32], strides = [1, 1]} : vector<1x64xf32> to vector<1x32xf32>
    %c7_i32_55 = arith.constant 7 : i32
    %188 = arith.subi %c7_i32_55, %c6_i32 : i32
    %189 = arith.index_cast %188 : i32 to index
    %c32_56 = arith.constant 32 : index
    %190 = vector.load %arg8[%189, %c32_56] : memref<8x64xf32, #tpu.memory_space<vmem>>, vector<1x32xf32>
    tpu.vector_store %arg8[%189, %c32_56], %187 {strides = array<i32>} : memref<8x64xf32, #tpu.memory_space<vmem>>, vector<1x32xf32>,
    %c7_i32_57 = arith.constant 7 : i32
    %191 = arith.index_cast %c7_i32_57 : i32 to index
    %c0_58 = arith.constant 0 : index
    %192 = vector.load %arg7[%191, %c0_58] : memref<8x256xf32, #tpu.memory_space<vmem>>, vector<1x256xf32>
    %cst_59 = arith.constant dense<0.000000e+00> : vector<1x256xf32>
    %193 = tpu.matmul %183, %7, %cst_59 {dimension_numbers = #tpu.dot_dimension_numbers<[1], [0], [0], [1], [0, 0, 1, 1], [], []>} : vector<1x64xf32>, vector<64x256xf32>, vector<1x256xf32> -> vector<1x256xf32>
    %194 = arith.addf %192, %193 : vector<1x256xf32>
    %195 = math.tanh %194 : vector<1x256xf32>
    %196 = vector.extract_strided_slice %195 {offsets = [0, 0], sizes = [1, 192], strides = [1, 1]} : vector<1x256xf32> to vector<1x192xf32>
    %cst_60 = arith.constant 5.000000e-01 : f32
    %197 = vector.broadcast %cst_60 : f32 to vector<1x192xf32>
    %198 = arith.mulf %196, %197 : vector<1x192xf32>
    %cst_61 = arith.constant 5.000000e-01 : f32
    %199 = vector.broadcast %cst_61 : f32 to vector<1x192xf32>
    %200 = arith.addf %198, %199 : vector<1x192xf32>
    %201 = vector.extract_strided_slice %200 {offsets = [0, 0], sizes = [1, 64], strides = [1, 1]} : vector<1x192xf32> to vector<1x64xf32>
    %202 = vector.extract_strided_slice %200 {offsets = [0, 64], sizes = [1, 64], strides = [1, 1]} : vector<1x192xf32> to vector<1x64xf32>
    %203 = vector.extract_strided_slice %200 {offsets = [0, 128], sizes = [1, 64], strides = [1, 1]} : vector<1x192xf32> to vector<1x64xf32>
    %204 = vector.extract_strided_slice %195 {offsets = [0, 192], sizes = [1, 64], strides = [1, 1]} : vector<1x256xf32> to vector<1x64xf32>
    %205 = arith.mulf %202, %181 : vector<1x64xf32>
    %206 = arith.mulf %201, %204 : vector<1x64xf32>
    %207 = arith.addf %205, %206 : vector<1x64xf32>
    %208 = math.tanh %207 : vector<1x64xf32>
    %209 = arith.mulf %203, %208 : vector<1x64xf32>
    %210 = vector.extract_strided_slice %209 {offsets = [0, 0], sizes = [1, 32], strides = [1, 1]} : vector<1x64xf32> to vector<1x32xf32>
    %211 = arith.index_cast %c7_i32_57 : i32 to index
    %c0_62 = arith.constant 0 : index
    %212 = vector.load %arg8[%211, %c0_62] : memref<8x64xf32, #tpu.memory_space<vmem>>, vector<1x32xf32>
    tpu.vector_store %arg8[%211, %c0_62], %210 {strides = array<i32>} : memref<8x64xf32, #tpu.memory_space<vmem>>, vector<1x32xf32>,
    %213 = vector.extract_strided_slice %209 {offsets = [0, 32], sizes = [1, 32], strides = [1, 1]} : vector<1x64xf32> to vector<1x32xf32>
    %c7_i32_63 = arith.constant 7 : i32
    %214 = arith.subi %c7_i32_63, %c7_i32_57 : i32
    %215 = arith.index_cast %214 : i32 to index
    %c32_64 = arith.constant 32 : index
    %216 = vector.load %arg8[%215, %c32_64] : memref<8x64xf32, #tpu.memory_space<vmem>>, vector<1x32xf32>
    tpu.vector_store %arg8[%215, %c32_64], %213 {strides = array<i32>} : memref<8x64xf32, #tpu.memory_space<vmem>>, vector<1x32xf32>,
    %c8_i32 = arith.constant 8 : i32
    %c0_65 = arith.constant 0 : index
    %c0_66 = arith.constant 0 : index
    %217 = vector.load %arg8[%c0_65, %c0_66] : memref<8x64xf32, #tpu.memory_space<vmem>>, vector<8x64xf32>
    %218 = arith.truncf %217 : vector<8x64xf32> to vector<8x64xbf16>
    %c0_67 = arith.constant 0 : index
    %c0_68 = arith.constant 0 : index
    %219 = vector.load %arg4[%c0_67, %c0_68] : memref<64x128xbf16, #tpu.memory_space<vmem>>, vector<64x128xbf16>
    %cst_69 = arith.constant dense<0.000000e+00> : vector<8x128xf32>
    %220 = tpu.matmul %218, %219, %cst_69 {dimension_numbers = #tpu.dot_dimension_numbers<[1], [0], [0], [1], [0, 0, 1, 1], [], []>} : vector<8x64xbf16>, vector<64x128xbf16>, vector<8x128xf32> -> vector<8x128xf32>
    %c0_70 = arith.constant 0 : index
    %c0_71 = arith.constant 0 : index
    %221 = vector.load %arg5[%c0_70, %c0_71] : memref<1x128xf32, #tpu.memory_space<vmem>>, vector<1x128xf32>
    %222 = vector.broadcast %221 : vector<1x128xf32> to vector<8x128xf32>
    %223 = arith.addf %220, %222 : vector<8x128xf32>
    %c0_72 = arith.constant 0 : index
    %c0_73 = arith.constant 0 : index
    %224 = vector.load %arg6[%c0_72, %c0_73] : memref<8x128xf32, #tpu.memory_space<vmem>>, vector<8x128xf32>
    tpu.vector_store %arg6[%c0_72, %c0_73], %223 {strides = array<i32>} : memref<8x128xf32, #tpu.memory_space<vmem>>, vector<8x128xf32>,
    return
  }
}

</mosaic_0001>

<bundles_post_ra>
// kernel: mul.17
= control target key start
LH: loop header
LB: loop body
LE: loop exit
PB: predicated region body
PF: predicated region fallthrough
CT: control target
= control target key end

     0   :  { %s56_s0 = inlined_call_operand.vmem [shape: f32[1,256], index: 0, kind: input, shape index: {}]   ;;  %s57_s1 = inlined_call_operand.vmem [shape: f32[1,256], index: 1, kind: input, shape index: {}]   ;;  %s58_s2 = inlined_call_operand.vmem [shape: f32[1,256], index: 2, kind: output, shape index: {}]  }
   0x1   :  { %v3_v0 = vld [vmem:[%s56_s0] sm:$0x1]  ;;  %v20_v2 = vld [vmem:[%s56_s0 + $0x1] sm:$0x1] }
   0x2   :  { %v4_v1 = vld [vmem:[%s57_s1] sm:$0x1]  ;;  %v21_v4 = vld [vmem:[%s57_s1 + $0x1] sm:$0x1] }
   0x3   :  { %v7_v3 = vmul.f32 %v4_v1, %v3_v0  ;;  %v16_v5 = vmul.f32 %v21_v4, %v20_v2 }
   0x5   :  { %9 = vst [vmem:[%s58_s2] sm:$0x1] %v7_v3 }
   0x6   :  { %22 = vst [vmem:[%s58_s2 + $0x1] sm:$0x1] %v16_v5 }

// kernel: bilstm_forward.1
= control target key start
LH: loop header
LB: loop body
LE: loop exit
PB: predicated region body
PF: predicated region fallthrough
CT: control target
= control target key end

     0   :  { %vm56_vm0 = vcmask 261120   ;;  %s1270_s0 = inlined_call_operand.vmem [shape: bf16[8,32], index: 0, kind: input, shape index: {}]   ;;  %s1271_s1 = inlined_call_operand.vmem [shape: bf16[32,256], index: 1, kind: input, shape index: {}]   ;;  %s1272_s2 = inlined_call_operand.vmem [shape: f32[1,256], index: 2, kind: input, shape index: {}]   ;;  %s1273_s3 = inlined_call_operand.vmem [shape: f32[64,256], index: 3, kind: input, shape index: {}]   ;;  %s1274_s4 = inlined_call_operand.vmem [shape: bf16[64,128], index: 4, kind: input, shape index: {}]   ;;  %s1275_s5 = inlined_call_operand.vmem [shape: f32[1,128], index: 5, kind: input, shape index: {}]   ;;  %s1276_s6 = inlined_call_operand.hbm [shape: f32[8,128], index: 6, kind: output, shape index: {}]  }
   0x1   :  { %v954_v0 = vld [vmem:[%s1273_s3 + $0x70] sm:$0xff]  ;;  %v959_v1 = vld [vmem:[%s1273_s3 + $0x60] sm:$0xff]  ;;  %v846_v4 = vld [vmem:[%s1271_s1 + $0x14] sm:$0xf0] }
   0x2   :  { %117 = vmatpush.msra.mxu3 %v954_v0  ;;  %274 = vmatpush.msra.mxu2 %v954_v0  ;;  %v966_v2 = vld [vmem:[%s1273_s3 + $0x50] sm:$0xff]  ;;  %v806_v7 = vld [vmem:[%s1271_s1 + $0x18] sm:$0xf0]  ;;  %v985_v8 = vld [vmem:[%s1273_s3 + $0x40] sm:$0xff] }
   0x3   :  { %v804_v3 = vld [vmem:[%s1271_s1 + $0x10] sm:$0xf]  ;;  %v845_v6 = vld [vmem:[%s1271_s1 + $0x14] sm:$0xf]  ;;  %v796_v10 = vld [vmem:[%s1271_s1] sm:$0xf] }
   0x4   :  { %118 = vmatpush.msra.mxu3 %v959_v1  ;;  %v805_v5 = vor.u32 %v846_v4, %v804_v3  ;;  %275 = vmatpush.msra.mxu2 %v959_v1  ;;  %v809_v9 = vor.u32 %v845_v6, %v806_v7  ;;  %v844_v11 = vld [vmem:[%s1271_s1 + $0x4] sm:$0xf0]  ;;  %v843_v12 = vld [vmem:[%s1271_s1 + $0x4] sm:$0xf]  ;;  %v798_v13 = vld [vmem:[%s1271_s1 + $0x8] sm:$0xf0] }
   0x5   :  { %v1003_v14 = vld [vmem:[%s1273_s3 + $0x30] sm:$0xff]  ;;  %v797_v15 = vor.u32 %v844_v11, %v796_v10  ;;  %v801_v16 = vor.u32 %v843_v12, %v798_v13  ;;  %v1010_v17 = vld [vmem:[%s1273_s3 + $0x20] sm:$0xff] }
   0x6   :  { %119 = vmatpush.msra.mxu3 %v966_v2  ;;  %66 = vmatpush.bf16.msra.mxu0 %v805_v5  ;;  %v25_v18 = vld [vmem:[%s1270_s0] sm:$0xf] }
   0x7   :  { %79 = vmatpush.bf16.msra.mxu1 %v809_v9  ;;  %276 = vmatpush.msra.mxu2 %v966_v2 }
   0x8   :  { %120 = vmatpush.msra.mxu3 %v985_v8 }
   0x9   :  { %277 = vmatpush.msra.mxu2 %v985_v8 }
   0xa   :  { %121 = vmatpush.msra.mxu3 %v1003_v14  ;;  %67 = vmatpush.bf16.msra.mxu0 %v797_v15 }
   0xb   :  { %11 = vsyncpa [#allocation5], 0  ;;  %v1020_v19 = vld [vmem:[%s1273_s3 + $0x10] sm:$0xff]  ;;  %v1025_v20 = vld [vmem:[%s1273_s3 + $0x78] sm:$0xff]  ;;  %80 = vmatpush.bf16.msra.mxu1 %v801_v16  ;;  %278 = vmatpush.msra.mxu2 %v1003_v14  ;;  %v913_v25 = vmov 0.0   ;;  %vm152_vm1 = vcmask 1040384  }
   0xc   :  { %122 = vmatpush.msra.mxu3 %v1010_v17  ;;  %v1033_v21 = vld [vmem:[%s1273_s3] sm:$0xff]  ;;  %v1040_v22 = vld [vmem:[%s1273_s3 + $0x68] sm:$0xff]  ;;  %v1048_v23 = vld [vmem:[%s1273_s3 + $0x58] sm:$0xff]  ;;  %vm105_vm2 = vcmask 523264   ;;  %vm180_vm3 = vcmask 253952   ;;  %vm182_vm4 = vcmask 516352  }
   0xd   :  { %810 = vmatmul.msk.bf16.vlgmr.msra.gmra.mxu0 %vm56_vm0, %v25_v18  ;;  %279 = vmatpush.msra.mxu2 %v1010_v17  ;;  %v1056_v24 = vld [vmem:[%s1273_s3 + $0x48] sm:$0xff]  ;;  %v1064_v26 = vld [vmem:[%s1273_s3 + $0x38] sm:$0xff]  ;;  %v30_v30 = vld [vmem:[%s1272_s2] sm:$0x3]  ;;  %s914_s2 = smov 64   ;;  %s915_s30 = smov [#allocation4]  }
   0xe   :  { %197 = vmatpush.msrb.mxu0 %v954_v0  ;;  %123 = vmatpush.msra.mxu3 %v1020_v19  ;;  %v1073_v27 = vld [vmem:[%s1273_s3 + $0x28] sm:$0xff]  ;;  %v1082_v28 = vld [vmem:[%s1273_s3 + $0x18] sm:$0xff]  ;;  %v32_v31 = vperm.slane %v30_v30, 0  ;;  %v33_v32 = vperm.slane %v30_v30, 1  ;;  %s783_s7 = sshll.u32 %s915_s30, 4  ;;  %s785_s9 = sshll.u32 %s1276_s6, 4  ;;  %s784_s7 = int_to_ptr.vmem [resolvable:$true] %s783_s7  ;;  %s786_s9 = int_to_ptr.hbm [resolvable:$true] %s785_s9 }
   0xf   :  { %217 = vmatpush.msrb.mxu1 %v1025_v20  ;;  %280 = vmatpush.msra.mxu2 %v1020_v19  ;;  %v1091_v29 = vld [vmem:[%s1273_s3 + $0x8] sm:$0xff] }
  0x10   :  { %811 = vmatmul.msk.bf16.vlgmr.msra.gmra.mxu1 %vm56_vm0, %v25_v18  ;;  %198 = vmatpush.msrb.mxu0 %v959_v1 }
  0x11   :  { %218 = vmatpush.msrb.mxu1 %v1040_v22  ;;  %124 = vmatpush.msra.mxu3 %v1033_v21 }
  0x12   :  { %125 = vmatmul.f32.vlgmr.msra.gmra.mxu3 %v913_v25  ;;  %199 = vmatpush.msrb.mxu0 %v966_v2 }
  0x13   :  { %137 = vmatpush.msrb.mxu3 %v1025_v20  ;;  %219 = vmatpush.msrb.mxu1 %v1048_v23 }
  0x14   :  { %200 = vmatpush.msrb.mxu0 %v985_v8  ;;  %281 = vmatpush.msra.mxu2 %v1033_v21 }
  0x15   :  { %138 = vmatpush.msrb.mxu3 %v1040_v22  ;;  %220 = vmatpush.msrb.mxu1 %v1056_v24 }
  0x16   :  { %201 = vmatpush.msrb.mxu0 %v1003_v14  ;;  %428 = vmatpush.msrb.mxu2 %v954_v0 }
  0x17   :  { %139 = vmatpush.msrb.mxu3 %v1048_v23  ;;  %221 = vmatpush.msrb.mxu1 %v1064_v26 }
  0x18   :  { %202 = vmatpush.msrb.mxu0 %v1010_v17  ;;  %429 = vmatpush.msrb.mxu2 %v959_v1 }
  0x19   :  { %140 = vmatpush.msrb.mxu3 %v1056_v24  ;;  %222 = vmatpush.msrb.mxu1 %v1073_v27 }
  0x1a   :  { %203 = vmatpush.msrb.mxu0 %v1020_v19  ;;  %430 = vmatpush.msrb.mxu2 %v966_v2 }
  0x1b   :  { %141 = vmatpush.msrb.mxu3 %v1064_v26  ;;  %223 = vmatpush.msrb.mxu1 %v1082_v28 }
  0x1c   :  { %204 = vmatpush.msrb.mxu0 %v1033_v21  ;;  %431 = vmatpush.msrb.mxu2 %v985_v8 }
  0x1d   :  { %142 = vmatpush.msrb.mxu3 %v1073_v27  ;;  %224 = vmatpush.msrb.mxu1 %v1091_v29 }
  0x1e   :  { %351 = vmatpush.msra.mxu0 %v954_v0  ;;  %432 = vmatpush.msrb.mxu2 %v1003_v14 }
  0x1f   :  { %371 = vmatpush.msra.mxu1 %v1025_v20  ;;  %143 = vmatpush.msrb.mxu3 %v1082_v28 }
  0x20   :  { %352 = vmatpush.msra.mxu0 %v959_v1  ;;  %433 = vmatpush.msrb.mxu2 %v1010_v17 }
  0x21   :  { %372 = vmatpush.msra.mxu1 %v1040_v22  ;;  %144 = vmatpush.msrb.mxu3 %v1091_v29 }
  0x22   :  { %145 = vmatmul.f32.vlgmr.msrb.gmra.mxu3 %v913_v25  ;;  %353 = vmatpush.msra.mxu0 %v966_v2 }
  0x23   :  { %373 = vmatpush.msra.mxu1 %v1048_v23  ;;  %294 = vmatpush.msra.mxu3 %v1025_v20 }
  0x24   :  { %354 = vmatpush.msra.mxu0 %v985_v8  ;;  %434 = vmatpush.msrb.mxu2 %v1020_v19 }
  0x25   :  { %374 = vmatpush.msra.mxu1 %v1056_v24  ;;  %295 = vmatpush.msra.mxu3 %v1040_v22 }
  0x26   :  { %355 = vmatpush.msra.mxu0 %v1003_v14  ;;  %435 = vmatpush.msrb.mxu2 %v1033_v21 }
  0x27   :  { %375 = vmatpush.msra.mxu1 %v1064_v26  ;;  %296 = vmatpush.msra.mxu3 %v1048_v23 }
  0x28   :  { %356 = vmatpush.msra.mxu0 %v1010_v17 }
  0x29   :  { %376 = vmatpush.msra.mxu1 %v1073_v27  ;;  %297 = vmatpush.msra.mxu3 %v1056_v24 }
  0x2a   :  { %357 = vmatpush.msra.mxu0 %v1020_v19 }
  0x2b   :  { %377 = vmatpush.msra.mxu1 %v1082_v28  ;;  %298 = vmatpush.msra.mxu3 %v1064_v26 }
  0x2c   :  { %358 = vmatpush.msra.mxu0 %v1033_v21 }
  0x2d   :  { %378 = vmatpush.msra.mxu1 %v1091_v29  ;;  %299 = vmatpush.msra.mxu3 %v1073_v27 }
  0x2f   :  { %300 = vmatpush.msra.mxu3 %v1082_v28 }
  0x31   :  { %301 = vmatpush.msra.mxu3 %v1091_v29 }
  0x33   :  { %448 = vmatpush.msrb.mxu3 %v1025_v20 }
  0x35   :  { %449 = vmatpush.msrb.mxu3 %v1040_v22 }
  0x37   :  { %450 = vmatpush.msrb.mxu3 %v1048_v23 }
  0x39   :  { %451 = vmatpush.msrb.mxu3 %v1056_v24 }
  0x3b   :  { %452 = vmatpush.msrb.mxu3 %v1064_v26 }
  0x3d   :  { %453 = vmatpush.msrb.mxu3 %v1073_v27 }
  0x3f   :  { %454 = vmatpush.msrb.mxu3 %v1082_v28 }
  0x41   :  { %455 = vmatpush.msrb.mxu3 %v1091_v29 }
  0x8a   :  { %v69_v33 = vpop.f32.mrf.mxu0 }
  0x8b   :  { %v70_v34 = vadd.f32 %v69_v33, %v32_v31 }
  0x8d   :  { %v82_v35 = vpop.f32.mrf.mxu1  ;;  %86 = vst [vmem:[#allocation2] sm:$0xff] %v70_v34 }
  0x8e   :  { %v83_v36 = vadd.f32 %v82_v35, %v33_v32 }
  0x90   :  { %87 = vst [vmem:[#allocation2 + $0x8] sm:$0xff] %v83_v36 }
  0x92   :  { %v71_v37 = vpop.f32.mrf.mxu0 }
  0x95   :  { %v84_v38 = vpop.f32.mrf.mxu1  ;;  %v126_v39 = vpop.f32.mrf.mxu3 }
  0x97   :  { %v104_v41 = vld [vmem:[#allocation2] ss:$8 sm:$0x3]  ;;  %v185_v61 = vld [vmem:[#allocation2 + $0x1] ss:$8 sm:$0x3] }
  0x98   :  { %v262_v32 = vld [vmem:[#allocation2 + $0x2] ss:$8 sm:$0x3] }
  0xa5   :  { %v146_v40 = vpop.f32.mrf.mxu3 }
  0xa6   :  { %v151_v42 = vrot.slane %v146_v40, 7 }
  0xa8   :  { %v153_v43 = vsel %vm152_vm1, %v126_v39, %v151_v42 }
  0xa9   :  { %v155_v44 = vadd.f32 %v153_v43, %v104_v41 }
  0xab   :  { %855 = vtanh.f32 %v155_v44 }
  0xb1   :  { %v856_v45 = vpop.eup %855 }
  0xb2   :  { %161 = vrot.lane.b32.xlu0 %v856_v45, %s914_s2  ;;  %v157_v46 = vmul.f32 0.5, %v856_v45 }
  0xb4   :  { %v158_v48 = vadd.f32 0.5, %v157_v46 }
  0xb6   :  { %v159_v51 = vmul.f32 0.0, %v158_v48  ;;  %v173_v55 = vrot.slane %v158_v48, 1 }
 0x124   :  { %v162_v47 = vpop.permute.xlu0 %161 }
 0x125   :  { %v163_v49 = vrot.slane %v162_v47, 1 }
 0x127   :  { %v165_v50 = vmul.f32 %v163_v49, %v158_v48 }
 0x129   :  { %167 = vrot.lane.b32.xlu0 %v165_v50, %s914_s2 }
 0x19b   :  { %v168_v52 = vpop.permute.xlu0 %167 }
 0x19c   :  { %v170_v53 = vadd.f32 %v168_v52, %v159_v51 }
 0x19e   :  { %857 = vtanh.f32 %v170_v53 }
 0x1a4   :  { %v858_v54 = vpop.eup %857 }
 0x1a5   :  { %176 = vrot.lane.b32.xlu1 %v858_v54, %s914_s2  ;;  %v416_v54 = vld [vmem:[#allocation2 + $0x4] ss:$8 sm:$0x3] }
 0x217   :  { %v177_v56 = vpop.permute.xlu1 %176 }
 0x218   :  { %v179_v57 = vmul.f32 %v177_v56, %v173_v55 }
 0x21a   :  { %812 = vmatmul.msk.f32.vlgmr.msrb.gmra.mxu0 %vm105_vm2, %v179_v57  ;;  %813 = vmatmul.msk.f32.vlgmr.msrb.gmra.mxu1 %vm105_vm2, %v179_v57  ;;  %181 = vst.msk [vmem:[#allocation3] sm:$0x1] %vm180_vm3, %v179_v57 }
 0x21b   :  { %183 = vst.msk [vmem:[#allocation3 + $0x7] sm:$0x1] %vm182_vm4, %v179_v57  ;;  %505 = vmatpush.msrb.mxu0 %v954_v0  ;;  %525 = vmatpush.msrb.mxu1 %v1025_v20 }
 0x21d   :  { %506 = vmatpush.msrb.mxu0 %v959_v1  ;;  %526 = vmatpush.msrb.mxu1 %v1040_v22 }
 0x21f   :  { %507 = vmatpush.msrb.mxu0 %v966_v2  ;;  %527 = vmatpush.msrb.mxu1 %v1048_v23 }
 0x221   :  { %508 = vmatpush.msrb.mxu0 %v985_v8  ;;  %528 = vmatpush.msrb.mxu1 %v1056_v24 }
 0x223   :  { %509 = vmatpush.msrb.mxu0 %v1003_v14  ;;  %529 = vmatpush.msrb.mxu1 %v1064_v26 }
 0x225   :  { %510 = vmatpush.msrb.mxu0 %v1010_v17  ;;  %530 = vmatpush.msrb.mxu1 %v1073_v27 }
 0x227   :  { %511 = vmatpush.msrb.mxu0 %v1020_v19  ;;  %531 = vmatpush.msrb.mxu1 %v1082_v28 }
 0x229   :  { %512 = vmatpush.msrb.mxu0 %v1033_v21  ;;  %532 = vmatpush.msrb.mxu1 %v1091_v29 }
 0x297   :  { %v226_v58 = vpop.f32.mrf.mxu1  ;;  %v206_v60 = vpop.f32.mrf.mxu0 }
 0x298   :  { %v231_v59 = vrot.slane %v226_v58, 7 }
 0x29a   :  { %v232_v62 = vsel %vm152_vm1, %v206_v60, %v231_v59 }
 0x29b   :  { %v234_v63 = vadd.f32 %v232_v62, %v185_v61 }
 0x29d   :  { %859 = vtanh.f32 %v234_v63 }
 0x2a3   :  { %v860_v3 = vpop.eup %859 }
 0x2a4   :  { %240 = vrot.lane.b32.xlu1 %v860_v3, %s914_s2  ;;  %v236_v4 = vmul.f32 0.5, %v860_v3 }
 0x2a6   :  { %v237_v7 = vadd.f32 0.5, %v236_v4 }
 0x2a8   :  { %v238_v10 = vmul.f32 %v237_v7, %v170_v53  ;;  %v252_v15 = vrot.slane %v237_v7, 1 }
 0x316   :  { %v241_v5 = vpop.permute.xlu1 %240 }
 0x317   :  { %v242_v6 = vrot.slane %v241_v5, 1 }
 0x319   :  { %v244_v9 = vmul.f32 %v242_v6, %v237_v7 }
 0x31b   :  { %246 = vrot.lane.b32.xlu2 %v244_v9, %s914_s2 }
 0x375   :  { %v247_v11 = vpop.permute.xlu2 %246 }
 0x376   :  { %v249_v12 = vadd.f32 %v247_v11, %v238_v10 }
 0x378   :  { %861 = vtanh.f32 %v249_v12 }
 0x37e   :  { %v862_v13 = vpop.eup %861 }
 0x37f   :  { %255 = vrot.lane.b32.xlu2 %v862_v13, %s914_s2  ;;  %v493_v13 = vld [vmem:[#allocation2 + $0x5] ss:$8 sm:$0x3] }
 0x3d9   :  { %v256_v16 = vpop.permute.xlu2 %255 }
 0x3da   :  { %v258_v18 = vmul.f32 %v256_v16, %v252_v15 }
 0x3dc   :  { %259 = vst.msk [vmem:[#allocation3 + $0x1] sm:$0x1] %vm180_vm3, %v258_v18  ;;  %814 = vmatmul.msk.f32.vlgmr.msra.gmra.mxu2 %vm105_vm2, %v258_v18  ;;  %815 = vmatmul.msk.f32.vlgmr.msra.gmra.mxu3 %vm105_vm2, %v258_v18 }
 0x3dd   :  { %260 = vst.msk [vmem:[#allocation3 + $0x6] sm:$0x1] %vm182_vm4, %v258_v18  ;;  %582 = vmatpush.msra.mxu2 %v954_v0  ;;  %602 = vmatpush.msra.mxu3 %v1025_v20 }
 0x3df   :  { %583 = vmatpush.msra.mxu2 %v959_v1  ;;  %603 = vmatpush.msra.mxu3 %v1040_v22 }
 0x3e1   :  { %584 = vmatpush.msra.mxu2 %v966_v2  ;;  %604 = vmatpush.msra.mxu3 %v1048_v23 }
 0x3e3   :  { %585 = vmatpush.msra.mxu2 %v985_v8  ;;  %605 = vmatpush.msra.mxu3 %v1056_v24 }
 0x3e5   :  { %586 = vmatpush.msra.mxu2 %v1003_v14  ;;  %606 = vmatpush.msra.mxu3 %v1064_v26 }
 0x3e7   :  { %587 = vmatpush.msra.mxu2 %v1010_v17  ;;  %607 = vmatpush.msra.mxu3 %v1073_v27 }
 0x3e9   :  { %588 = vmatpush.msra.mxu2 %v1020_v19  ;;  %608 = vmatpush.msra.mxu3 %v1082_v28 }
 0x3eb   :  { %589 = vmatpush.msra.mxu2 %v1033_v21  ;;  %609 = vmatpush.msra.mxu3 %v1091_v29 }
 0x45f   :  { %v303_v25 = vpop.f32.mrf.mxu3  ;;  %v283_v31 = vpop.f32.mrf.mxu2 }
 0x460   :  { %v308_v30 = vrot.slane %v303_v25, 7 }
 0x462   :  { %v309_v33 = vsel %vm152_vm1, %v283_v31, %v308_v30 }
 0x463   :  { %v311_v34 = vadd.f32 %v309_v33, %v262_v32 }
 0x465   :  { %863 = vtanh.f32 %v311_v34 }
 0x46b   :  { %v864_v35 = vpop.eup %863 }
 0x46c   :  { %317 = vrot.lane.b32.xlu0 %v864_v35, %s914_s2  ;;  %v313_v36 = vmul.f32 0.5, %v864_v35 }
 0x46e   :  { %v314_v38 = vadd.f32 0.5, %v313_v36 }
 0x470   :  { %v315_v41 = vmul.f32 %v314_v38, %v249_v12  ;;  %v329_v45 = vrot.slane %v314_v38, 1 }
 0x4de   :  { %v318_v37 = vpop.permute.xlu0 %317 }
 0x4df   :  { %v319_v39 = vrot.slane %v318_v37, 1 }
 0x4e1   :  { %v321_v40 = vmul.f32 %v319_v39, %v314_v38 }
 0x4e3   :  { %323 = vrot.lane.b32.xlu1 %v321_v40, %s914_s2 }
 0x555   :  { %v324_v42 = vpop.permute.xlu1 %323 }
 0x556   :  { %v326_v43 = vadd.f32 %v324_v42, %v315_v41 }
 0x558   :  { %865 = vtanh.f32 %v326_v43 }
 0x55e   :  { %v866_v44 = vpop.eup %865 }
 0x55f   :  { %332 = vrot.lane.b32.xlu2 %v866_v44, %s914_s2  ;;  %v570_v44 = vld [vmem:[#allocation2 + $0x6] ss:$8 sm:$0x3] }
 0x5b9   :  { %v333_v46 = vpop.permute.xlu2 %332 }
 0x5ba   :  { %v335_v47 = vmul.f32 %v333_v46, %v329_v45 }
 0x5bc   :  { %336 = vst.msk [vmem:[#allocation3 + $0x2] sm:$0x1] %vm180_vm3, %v335_v47  ;;  %816 = vmatmul.msk.f32.vlgmr.msra.gmra.mxu0 %vm105_vm2, %v335_v47  ;;  %817 = vmatmul.msk.f32.vlgmr.msra.gmra.mxu1 %vm105_vm2, %v335_v47 }
 0x5bd   :  { %337 = vst.msk [vmem:[#allocation3 + $0x5] sm:$0x1] %vm182_vm4, %v335_v47  ;;  %659 = vmatpush.msra.mxu0 %v954_v0  ;;  %679 = vmatpush.msra.mxu1 %v1025_v20 }
 0x5bf   :  { %660 = vmatpush.msra.mxu0 %v959_v1  ;;  %680 = vmatpush.msra.mxu1 %v1040_v22 }
 0x5c1   :  { %661 = vmatpush.msra.mxu0 %v966_v2  ;;  %681 = vmatpush.msra.mxu1 %v1048_v23 }
 0x5c3   :  { %662 = vmatpush.msra.mxu0 %v985_v8  ;;  %682 = vmatpush.msra.mxu1 %v1056_v24  ;;  %v339_v8 = vld [vmem:[#allocation2 + $0x3] ss:$8 sm:$0x3] }
 0x5c5   :  { %663 = vmatpush.msra.mxu0 %v1003_v14  ;;  %683 = vmatpush.msra.mxu1 %v1064_v26 }
 0x5c7   :  { %664 = vmatpush.msra.mxu0 %v1010_v17  ;;  %684 = vmatpush.msra.mxu1 %v1073_v27 }
 0x5c9   :  { %665 = vmatpush.msra.mxu0 %v1020_v19  ;;  %685 = vmatpush.msra.mxu1 %v1082_v28 }
 0x5cb   :  { %666 = vmatpush.msra.mxu0 %v1033_v21  ;;  %686 = vmatpush.msra.mxu1 %v1091_v29 }
 0x639   :  { %v380_v0 = vpop.f32.mrf.mxu1  ;;  %v360_v2 = vpop.f32.mrf.mxu0 }
 0x63a   :  { %v385_v1 = vrot.slane %v380_v0, 7 }
 0x63c   :  { %v386_v14 = vsel %vm152_vm1, %v360_v2, %v385_v1 }
 0x63d   :  { %v388_v20 = vadd.f32 %v386_v14, %v339_v8 }
 0x63f   :  { %867 = vtanh.f32 %v388_v20 }
 0x645   :  { %v868_v22 = vpop.eup %867 }
 0x646   :  { %394 = vrot.lane.b32.xlu0 %v868_v22, %s914_s2  ;;  %v390_v17 = vmul.f32 0.5, %v868_v22 }
 0x648   :  { %v391_v19 = vadd.f32 0.5, %v390_v17 }
 0x64a   :  { %v392_v21 = vmul.f32 %v391_v19, %v326_v43  ;;  %v406_v48 = vrot.slane %v391_v19, 1 }
 0x6b8   :  { %v395_v23 = vpop.permute.xlu0 %394 }
 0x6b9   :  { %v396_v24 = vrot.slane %v395_v23, 1 }
 0x6bb   :  { %v398_v26 = vmul.f32 %v396_v24, %v391_v19 }
 0x6bd   :  { %400 = vrot.lane.b32.xlu1 %v398_v26, %s914_s2 }
 0x72f   :  { %v401_v27 = vpop.permute.xlu1 %400 }
 0x730   :  { %v403_v28 = vadd.f32 %v401_v27, %v392_v21 }
 0x732   :  { %869 = vtanh.f32 %v403_v28 }
 0x738   :  { %v870_v29 = vpop.eup %869 }
 0x739   :  { %409 = vrot.lane.b32.xlu2 %v870_v29, %s914_s2  ;;  %v647_v29 = vld [vmem:[#allocation2 + $0x7] ss:$8 sm:$0x3] }
 0x793   :  { %v410_v49 = vpop.permute.xlu2 %409 }
 0x794   :  { %v412_v50 = vmul.f32 %v410_v49, %v406_v48 }
 0x796   :  { %413 = vst.msk [vmem:[#allocation3 + $0x3] sm:$0x1] %vm180_vm3, %v412_v50  ;;  %818 = vmatmul.msk.f32.vlgmr.msrb.gmra.mxu2 %vm105_vm2, %v412_v50  ;;  %819 = vmatmul.msk.f32.vlgmr.msrb.gmra.mxu3 %vm105_vm2, %v412_v50 }
 0x797   :  { %414 = vst.msk [vmem:[#allocation3 + $0x4] sm:$0x1] %vm182_vm4, %v412_v50 }
 0x819   :  { %v457_v51 = vpop.f32.mrf.mxu3  ;;  %v437_v53 = vpop.f32.mrf.mxu2 }
 0x81a   :  { %v462_v52 = vrot.slane %v457_v51, 7 }
 0x81c   :  { %v463_v55 = vsel %vm152_vm1, %v437_v53, %v462_v52 }
 0x81d   :  { %v465_v56 = vadd.f32 %v463_v55, %v416_v54 }
 0x81f   :  { %871 = vtanh.f32 %v465_v56  ;;  %v850_v56 = vld [vmem:[%s1274_s4 + $0x18] sm:$0xff] }
 0x820   :  { %768 = vmatpush.bf16.msrb.mxu2 %v850_v56 }
 0x825   :  { %v872_v57 = vpop.eup %871 }
 0x826   :  { %471 = vrot.lane.b32.xlu0 %v872_v57, %s914_s2  ;;  %v467_v58 = vmul.f32 0.5, %v872_v57 }
 0x828   :  { %v468_v60 = vadd.f32 0.5, %v467_v58 }
 0x82a   :  { %v469_v63 = vmul.f32 %v468_v60, %v403_v28  ;;  %v483_v6 = vrot.slane %v468_v60, 1 }
 0x898   :  { %v472_v59 = vpop.permute.xlu0 %471 }
 0x899   :  { %v473_v61 = vrot.slane %v472_v59, 1 }
 0x89b   :  { %v475_v62 = vmul.f32 %v473_v61, %v468_v60  ;;  %v849_v61 = vld [vmem:[%s1274_s4 + $0x10] sm:$0xff] }
 0x89c   :  { %769 = vmatpush.bf16.msrb.mxu2 %v849_v61 }
 0x89d   :  { %477 = vrot.lane.b32.xlu1 %v475_v62, %s914_s2  ;;  %v848_v62 = vld [vmem:[%s1274_s4 + $0x8] sm:$0xff] }
 0x8a0   :  { %770 = vmatpush.bf16.msrb.mxu2 %v848_v62 }
 0x90f   :  { %v478_v3 = vpop.permute.xlu1 %477 }
 0x910   :  { %v480_v4 = vadd.f32 %v478_v3, %v469_v63  ;;  %v847_v63 = vld [vmem:[%s1274_s4] sm:$0xff] }
 0x911   :  { %771 = vmatpush.bf16.msrb.mxu2 %v847_v63 }
 0x912   :  { %873 = vtanh.f32 %v480_v4 }
 0x918   :  { %v874_v5 = vpop.eup %873 }
 0x919   :  { %486 = vrot.lane.b32.xlu2 %v874_v5, %s914_s2 }
 0x973   :  { %v487_v7 = vpop.permute.xlu2 %486 }
 0x974   :  { %v489_v9 = vmul.f32 %v487_v7, %v483_v6 }
 0x976   :  { %490 = vst.msk [vmem:[#allocation3 + $0x4] sm:$0x1] %vm180_vm3, %v489_v9  ;;  %820 = vmatmul.msk.f32.vlgmr.msrb.gmra.mxu0 %vm105_vm2, %v489_v9  ;;  %821 = vmatmul.msk.f32.vlgmr.msrb.gmra.mxu1 %vm105_vm2, %v489_v9 }
 0x977   :  { %491 = vst.msk [vmem:[#allocation3 + $0x3] sm:$0x1] %vm182_vm4, %v489_v9  ;;  %v854_v9 = vld [vmem:[%s1275_s5] ss:$0 sm:$0xff] }
 0x9f3   :  { %v534_v10 = vpop.f32.mrf.mxu1  ;;  %v514_v12 = vpop.f32.mrf.mxu0 }
 0x9f4   :  { %v539_v11 = vrot.slane %v534_v10, 7 }
 0x9f6   :  { %v540_v15 = vsel %vm152_vm1, %v514_v12, %v539_v11 }
 0x9f7   :  { %v542_v16 = vadd.f32 %v540_v15, %v493_v13 }
 0x9f9   :  { %875 = vtanh.f32 %v542_v16 }
 0x9ff   :  { %v876_v18 = vpop.eup %875 }
 0xa00   :  { %548 = vrot.lane.b32.xlu0 %v876_v18, %s914_s2  ;;  %v544_v25 = vmul.f32 0.5, %v876_v18 }
 0xa02   :  { %v545_v31 = vadd.f32 0.5, %v544_v25 }
 0xa04   :  { %v546_v34 = vmul.f32 %v545_v31, %v480_v4  ;;  %v560_v38 = vrot.slane %v545_v31, 1 }
 0xa72   :  { %v549_v30 = vpop.permute.xlu0 %548 }
 0xa73   :  { %v550_v32 = vrot.slane %v549_v30, 1 }
 0xa75   :  { %v552_v33 = vmul.f32 %v550_v32, %v545_v31 }
 0xa77   :  { %554 = vrot.lane.b32.xlu1 %v552_v33, %s914_s2 }
 0xae9   :  { %v555_v35 = vpop.permute.xlu1 %554 }
 0xaea   :  { %v557_v36 = vadd.f32 %v555_v35, %v546_v34 }
 0xaec   :  { %877 = vtanh.f32 %v557_v36 }
 0xaf2   :  { %v878_v37 = vpop.eup %877 }
 0xaf3   :  { %563 = vrot.lane.b32.xlu2 %v878_v37, %s914_s2 }
 0xb4d   :  { %v564_v39 = vpop.permute.xlu2 %563 }
 0xb4e   :  { %v566_v40 = vmul.f32 %v564_v39, %v560_v38 }
 0xb50   :  { %567 = vst.msk [vmem:[#allocation3 + $0x5] sm:$0x1] %vm180_vm3, %v566_v40  ;;  %822 = vmatmul.msk.f32.vlgmr.msra.gmra.mxu2 %vm105_vm2, %v566_v40  ;;  %823 = vmatmul.msk.f32.vlgmr.msra.gmra.mxu3 %vm105_vm2, %v566_v40 }
 0xb51   :  { %568 = vst.msk [vmem:[#allocation3 + $0x2] sm:$0x1] %vm182_vm4, %v566_v40 }
 0xbd3   :  { %v611_v41 = vpop.f32.mrf.mxu3  ;;  %v591_v43 = vpop.f32.mrf.mxu2 }
 0xbd4   :  { %v616_v42 = vrot.slane %v611_v41, 7 }
 0xbd6   :  { %v617_v45 = vsel %vm152_vm1, %v591_v43, %v616_v42 }
 0xbd7   :  { %v619_v46 = vadd.f32 %v617_v45, %v570_v44 }
 0xbd9   :  { %879 = vtanh.f32 %v619_v46 }
 0xbdf   :  { %v880_v47 = vpop.eup %879 }
 0xbe0   :  { %625 = vrot.lane.b32.xlu0 %v880_v47, %s914_s2  ;;  %v621_v0 = vmul.f32 0.5, %v880_v47 }
 0xbe2   :  { %v622_v2 = vadd.f32 0.5, %v621_v0 }
 0xbe4   :  { %v623_v20 = vmul.f32 %v622_v2, %v557_v36  ;;  %v637_v19 = vrot.slane %v622_v2, 1 }
 0xc52   :  { %v626_v1 = vpop.permute.xlu0 %625 }
 0xc53   :  { %v627_v8 = vrot.slane %v626_v1, 1 }
 0xc55   :  { %v629_v14 = vmul.f32 %v627_v8, %v622_v2 }
 0xc57   :  { %631 = vrot.lane.b32.xlu1 %v629_v14, %s914_s2 }
 0xcc9   :  { %v632_v22 = vpop.permute.xlu1 %631 }
 0xcca   :  { %v634_v17 = vadd.f32 %v632_v22, %v623_v20 }
 0xccc   :  { %881 = vtanh.f32 %v634_v17 }
 0xcd2   :  { %v882_v23 = vpop.eup %881 }
 0xcd3   :  { %640 = vrot.lane.b32.xlu2 %v882_v23, %s914_s2 }
 0xd2d   :  { %v641_v24 = vpop.permute.xlu2 %640 }
 0xd2e   :  { %v643_v26 = vmul.f32 %v641_v24, %v637_v19 }
 0xd30   :  { %644 = vst.msk [vmem:[#allocation3 + $0x6] sm:$0x1] %vm180_vm3, %v643_v26  ;;  %824 = vmatmul.msk.f32.vlgmr.msra.gmra.mxu0 %vm105_vm2, %v643_v26  ;;  %825 = vmatmul.msk.f32.vlgmr.msra.gmra.mxu1 %vm105_vm2, %v643_v26 }
 0xd31   :  { %645 = vst.msk [vmem:[#allocation3 + $0x1] sm:$0x1] %vm182_vm4, %v643_v26 }
 0xdad   :  { %v688_v21 = vpop.f32.mrf.mxu1  ;;  %v668_v28 = vpop.f32.mrf.mxu0 }
 0xdae   :  { %v693_v27 = vrot.slane %v688_v21, 7 }
 0xdb0   :  { %v694_v48 = vsel %vm152_vm1, %v668_v28, %v693_v27 }
 0xdb1   :  { %v696_v49 = vadd.f32 %v694_v48, %v647_v29 }
 0xdb3   :  { %883 = vtanh.f32 %v696_v49 }
 0xdb9   :  { %v884_v50 = vpop.eup %883 }
 0xdba   :  { %702 = vrot.lane.b32.xlu0 %v884_v50, %s914_s2  ;;  %v698_v51 = vmul.f32 0.5, %v884_v50 }
 0xdbc   :  { %v699_v53 = vadd.f32 0.5, %v698_v51 }
 0xdbe   :  { %v700_v57 = vmul.f32 %v699_v53, %v634_v17  ;;  %v714_v3 = vrot.slane %v699_v53, 1 }
 0xe2c   :  { %v703_v52 = vpop.permute.xlu0 %702 }
 0xe2d   :  { %v704_v54 = vrot.slane %v703_v52, 1 }
 0xe2f   :  { %v706_v55 = vmul.f32 %v704_v54, %v699_v53 }
 0xe31   :  { %708 = vrot.lane.b32.xlu1 %v706_v55, %s914_s2 }
 0xea3   :  { %v709_v58 = vpop.permute.xlu1 %708 }
 0xea4   :  { %v711_v59 = vadd.f32 %v709_v58, %v700_v57 }
 0xea6   :  { %885 = vtanh.f32 %v711_v59 }
 0xeac   :  { %v886_v60 = vpop.eup %885 }
 0xead   :  { %717 = vrot.lane.b32.xlu2 %v886_v60, %s914_s2 }
 0xf07   :  { %v718_v4 = vpop.permute.xlu2 %717 }
 0xf08   :  { %v720_v5 = vmul.f32 %v718_v4, %v714_v3 }
 0xf0a   :  { %721 = vst.msk [vmem:[#allocation3 + $0x7] sm:$0x1] %vm180_vm3, %v720_v5 }
 0xf0b   :  { %722 = vst.msk [vmem:[#allocation3] sm:$0x1] %vm182_vm4, %v720_v5 }
 0xf12   :  { %v723_v6 = vld [vmem:[#allocation3] sm:$0xff] }
 0xf13   :  { %v724_v7 = vpack.c.bf16 %v723_v6, %v723_v6 }
 0xf15   :  { %842 = vmatmul.msk.bf16.vlgmr.msrb.gmra.mxu2 %vm105_vm2, %v724_v7 }
 0xf98   :  { %v773_v10 = vpop.f32.mrf.mxu2 }
 0xf99   :  { %v774_v11 = vadd.f32 %v854_v9, %v773_v10 }
 0xf9b   :  { %777 = vst [vmem:[#allocation4] sm:$0xff] %v774_v11 }
 0xf9c   :  { %788 = dma.vmem_to_hbm [thread:$0]  %s784_s7, 128, %s786_s9, [#allocation5]  }
 0xfa0   :  { %v775_v12 = vpop.f32.mrf.mxu2 }
 0xfa1   :  { %911 = dma.done.wait [#allocation5], 128  }
 0xfa2   :  { %912 = vsyncadd [#allocation5], 4294967168 }
 0xfa3   :  { %793 = vsyncpa [#allocation5], 1 }

</bundles_post_ra>
